<compile_context>
chip_gen: v6e
topology: v6e:2x2x1
jax: 0.10.0
libtpu: 0.0.40
codegen_flags: <defaults>
</compile_context>

<pallas_src>
import jax
import jax.numpy as jnp
from jax.experimental import pallas as pl
from jax.experimental.pallas import tpu as pltpu

_LANE = 128
# (1, n) single-block fallback only below this raw size (sublane padding makes
# a (1, n) VMEM buffer ~8x its raw bytes, so keep it small).
_UNALIGNED_SMALL_BYTES = 128 * 1024
# Explicit scoped-VMEM limit for the gridded calls; 32 MiB is <= the physical
# VMEM headroom on v5e/v6e (128 MiB) and v7x (64 MiB), and covers the
# double-buffered in+out of the largest block choice (4 * 4 MiB = 16 MiB).
_VMEM_LIMIT_BYTES = 32 * 1024 * 1024


def _sigmoid_kernel(x_ref, o_ref):
    # Upcast to f32 for the transcendental (v5e has no bf16 VPU/EUP path;
    # neutral in the HBM-bound aligned path on v6e/v7x).
    # tanh form: one EUP push per vreg instead of exp + add + exact
    # reciprocal (multi-op divide sequence on the VPU).  Saturates exactly to
    # 0/1 for large |x| and matches jax.nn.sigmoid well within 1e-6.
    x = x_ref[...].astype(jnp.float32)
    y = 0.5 * jnp.tanh(0.5 * x) + 0.5
    o_ref[...] = y.astype(o_ref.dtype)


def _round_up(a: int, b: int) -> int:
    return (a + b - 1) // b * b


def _sublane_min(dtype) -> int:
    # Minimum sublane packing per dtype width: f32 -> 8, bf16 -> 16, int8/fp8 -> 32.
    return {1: 32, 2: 16}.get(jnp.dtype(dtype).itemsize, 8)


def _chip_params():
    """Returns (tensorcores_per_chip, small_path_bytes, target_block_bytes)."""
    try:
        kind = jax.devices()[0].device_kind.lower()
    except Exception:  # pragma: no cover - be safe on exotic backends
        kind = ""
    if "v7" in kind:
        # 2 TCs/chip, 3.2 TB/s HBM: big blocks, but keep the small-path
        # threshold low so mid-size tensors still split across both cores.
        return 2, 512 * 1024, 4 << 20
    if "v5 lite" in kind or "v5e" in kind or "v5lite" in kind:
        # 1 TC, 16 MiB default scoped VMEM: 2 MiB blocks (4 bufs -> 8 MiB).
        return 1, 2 << 20, 2 << 20
    # v6e and other single/mega-core chips: 32 MiB default scoped VMEM.
    return 1, 2 << 20, 4 << 20


def _choose_grid(rows: int, sub_min: int, target_rows: int, num_tc: int):
    """Pick (block_rows, grid_len) for a (rows, 128) slab."""
    steps = pl.cdiv(rows, target_rows)
    if num_tc > 1:
        # Keep a multiple of num_tc steps so both TensorCores get equal work.
        steps = max(num_tc, _round_up(steps, num_tc))
    block_rows = max(sub_min, _round_up(pl.cdiv(rows, steps), sub_min))
    grid_len = pl.cdiv(rows, block_rows)
    if num_tc > 1 and grid_len > 1 and grid_len % num_tc != 0:
        # Nudge the block size down (bounded search) until the step count
        # divides evenly across TensorCores; avoids a 2:1 tail imbalance.
        floor = max(sub_min, block_rows // 2)
        br = block_rows
        while br - sub_min >= floor:
            br -= sub_min
            if pl.cdiv(rows, br) % num_tc == 0:
                block_rows, grid_len = br, pl.cdiv(rows, br)
                break
    return block_rows, grid_len


def _sigmoid_rows_flat(flat, rows, dtype, itemsize, sub_min, num_tc,
                       small_bytes, target_block_bytes):
    """Sigmoid over a lane-aligned flat array of rows*128 elements."""
    n = rows * _LANE
    x2d = flat.reshape(rows, _LANE)

    # Grid-free single block for small/medium tensors (no per-step overhead).
    if n * itemsize <= small_bytes:
        out2d = pl.pallas_call(
            _sigmoid_kernel,
            out_shape=jax.ShapeDtypeStruct((rows, _LANE), dtype),
        )(x2d)
        return out2d.reshape(-1)

    target_rows = max(sub_min, target_block_bytes // (_LANE * itemsize))
    block_rows, grid_len = _choose_grid(rows, sub_min, target_rows, num_tc)

    # TODO(synk): verify on v7x that "parallel" shards this axis across both
    # TensorCores; if not, switch to pltpu.CORE_PARALLEL / an explicit core_map.
    out2d = pl.pallas_call(
        _sigmoid_kernel,
        out_shape=jax.ShapeDtypeStruct((rows, _LANE), dtype),
        grid_spec=pltpu.PrefetchScalarGridSpec(
            num_scalar_prefetch=0,
            grid=(grid_len,),
            in_specs=[pl.BlockSpec((block_rows, _LANE), lambda i: (i, 0))],
            out_specs=pl.BlockSpec((block_rows, _LANE), lambda i: (i, 0)),
        ),
        compiler_params=pltpu.CompilerParams(
            dimension_semantics=("parallel",),
            vmem_limit_bytes=_VMEM_LIMIT_BYTES,
        ),
    )(x2d)
    return out2d.reshape(-1)


def _sigmoid_single_block_1d(flat_1d, dtype):
    """One (1, n) block for tiny lane-unaligned pieces (tails / small inputs)."""
    n = flat_1d.shape[0]
    out2d = pl.pallas_call(
        _sigmoid_kernel,
        out_shape=jax.ShapeDtypeStruct((1, n), dtype),
    )(flat_1d.reshape(1, n))
    return out2d.reshape(-1)


def sigmoid_pallas(x: jax.Array) -> jax.Array:
    """Elementwise sigmoid matching torch.nn.Sigmoid semantics."""
    orig_shape = x.shape
    dtype = x.dtype
    n = x.size
    if n == 0:
        return x

    itemsize = jnp.dtype(dtype).itemsize
    sub_min = _sublane_min(dtype)
    num_tc, small_bytes, target_block_bytes = _chip_params()
    flat = x.reshape(-1)  # contiguous row-major view: free reshape

    if n % _LANE == 0:
        out_flat = _sigmoid_rows_flat(flat, n // _LANE, dtype, itemsize,
                                      sub_min, num_tc, small_bytes,
                                      target_block_bytes)
        return out_flat.reshape(orig_shape)

    # --- lane-unaligned inputs -------------------------------------------------
    chunk = sub_min * _LANE
    bulk_n = (n // chunk) * chunk
    if bulk_n == 0 or n * itemsize <= _UNALIGNED_SMALL_BYTES:
        # Tiny: one (1, n) block; sublane padding is negligible at this size.
        return _sigmoid_single_block_1d(flat, dtype).reshape(orig_shape)

    # Large: route the aligned bulk through the sublane/lane-dense fast path
    # and handle the tiny (< sub_min*128 element) tail with one small block.
    out_bulk = _sigmoid_rows_flat(flat[:bulk_n], bulk_n // _LANE, dtype,
                                  itemsize, sub_min, num_tc, small_bytes,
                                  target_block_bytes)
    out_tail = _sigmoid_single_block_1d(flat[bulk_n:], dtype)
    out_flat = jnp.concatenate([out_bulk, out_tail])
    return out_flat.reshape(orig_shape)


class Model:
    """JAX mirror of the PyTorch Model: forward(x) = sigmoid(x)."""

    def __call__(self, x):
        # TODO(synk): self.relu in the PyTorch module is constructed but never
        # used in forward, so it is intentionally not implemented here.
        return sigmoid_pallas(x)


if __name__ == "__main__":
    key = jax.random.PRNGKey(0)
    k_small, k_big, k_odd = jax.random.split(key, 3)

    model = Model()

    # Primary input: small NCHW tensor like the PyTorch module would see.
    x = jax.random.normal(k_small, (2, 4, 16, 16), dtype=jnp.float32)
    y = model(x)
    jax.block_until_ready(y)
    assert y.shape == x.shape and y.dtype == x.dtype
    assert jnp.allclose(y, jax.nn.sigmoid(x), atol=1e-6), "small-path mismatch"

    # Larger lane-aligned tensor: exercises the gridded (rows, 128) fast path
    # (chip-dependent block size; 2 balanced steps on v7x).
    x_big = jax.random.normal(k_big, (8, 8, 128, 128), dtype=jnp.float32)
    y_big = model(x_big)
    jax.block_until_ready(y_big)
    assert jnp.allclose(y_big, jax.nn.sigmoid(x_big), atol=1e-6), "tiled-path mismatch"

    # Lane-unaligned tensor: exercises the aligned-bulk + tiny-tail path.
    x_odd = jax.random.normal(k_odd, (321, 413), dtype=jnp.float32)
    y_odd = model(x_odd)
    jax.block_until_ready(y_odd)
    assert jnp.allclose(y_odd, jax.nn.sigmoid(x_odd), atol=1e-6), "unaligned-path mismatch"

    print("KERNEL_OK")
</pallas_src>

<mosaic_0001>
module attributes {stable_mosaic.version = 11 : i64} {
  func.func @_sigmoid_kernel(%arg0: memref<16x128xf32, #tpu.memory_space<vmem>>, %arg1: memref<16x128xf32, #tpu.memory_space<vmem>>) attributes {dimension_semantics = [], scalar_prefetch = 0 : i64, scratch_operands = 0 : i64, tpu.core_type = #tpu.core_type<tc>} {
    %c0 = arith.constant 0 : index
    %c0_0 = arith.constant 0 : index
    %0 = vector.load %arg0[%c0, %c0_0] : memref<16x128xf32, #tpu.memory_space<vmem>>, vector<16x128xf32>
    %cst = arith.constant 5.000000e-01 : f32
    %1 = vector.broadcast %cst : f32 to vector<16x128xf32>
    %2 = arith.mulf %1, %0 : vector<16x128xf32>
    %3 = math.tanh %2 : vector<16x128xf32>
    %cst_1 = arith.constant 5.000000e-01 : f32
    %4 = vector.broadcast %cst_1 : f32 to vector<16x128xf32>
    %5 = arith.mulf %4, %3 : vector<16x128xf32>
    %cst_2 = arith.constant 5.000000e-01 : f32
    %6 = vector.broadcast %cst_2 : f32 to vector<16x128xf32>
    %7 = arith.addf %5, %6 : vector<16x128xf32>
    %c0_3 = arith.constant 0 : index
    %c0_4 = arith.constant 0 : index
    %8 = vector.load %arg1[%c0_3, %c0_4] : memref<16x128xf32, #tpu.memory_space<vmem>>, vector<16x128xf32>
    tpu.vector_store %arg1[%c0_3, %c0_4], %7 {strides = array<i32>} : memref<16x128xf32, #tpu.memory_space<vmem>>, vector<16x128xf32>,
    return
  }
}

</mosaic_0001>

<bundles_post_ra>
// kernel: tpu_custom_call.1
= control target key start
LH: loop header
LB: loop body
LE: loop exit
PB: predicated region body
PF: predicated region fallthrough
CT: control target
= control target key end

     0   :  { %6 = vsyncpa [#allocation3], 0  ;;  %s130_s0 = inlined_call_operand.hbm [shape: f32[16,128], index: 0, kind: input, shape index: {}]   ;;  %s131_s1 = inlined_call_operand.hbm [shape: f32[16,128], index: 1, kind: output, shape index: {}]  }
   0x1   :  { %7 = vsyncpa [#allocation4], 0  ;;  %s104_s6 = smov [#allocation2]  }
   0x2   :  { %s13_s7 = sshll.u32 %s104_s6, 4  ;;  %s14_s7 = int_to_ptr.vmem [resolvable:$true] %s13_s7 }
   0x3   :  { %s68_s8 = scalar_lea.vmem %s14_s7, 256  ;;  %p73_p1 = scmp.lt.s32.totalorder %s14_s7, %s14_s7 }
   0x4   :  { %p69_p0 = scmp.ne.s32.totalorder %s14_s7, %s68_s8  ;;  %p74_p2 = scmp.lt.s32.totalorder %s68_s8, %s68_s8 }
   0x6   :  { %p75_p3 = por %p74_p2, %p73_p1 }
   0x8   :  { %p76_p4 = pnand %p75_p3, %p69_p0 }
   0xa   :  { %79 = shalt.err (!%p76_p4)
}
   0xb   :  { %s105_s9 = smov 128   ;;  %s106_s10 = smov 8  }
   0xc   :  { %19 = dma.hbm_to_vmem [thread:$0]  %s130_s0, 256, %s14_s7, [#allocation3], %s105_s9, %s105_s9, %s106_s10  }
   0xd   :  { %100 = dma.done.wait [#allocation3], 256  }
   0xe   :  { %101 = vsyncadd [#allocation3], 4294967040  ;;  %v23_v0 = vld [vmem:[#allocation2] sm:$0xff]  ;;  %v24_v1 = vld [vmem:[#allocation2 + $0x8] sm:$0xff]  ;;  %s107_s13 = smov [#allocation5]  }
   0xf   :  { %v25_v2 = vmul.f32 0.5, %v23_v0  ;;  %v26_v3 = vmul.f32 0.5, %v24_v1  ;;  %s40_s14 = sshll.u32 %s107_s13, 4  ;;  %s41_s14 = int_to_ptr.vmem [resolvable:$true] %s40_s14 }
  0x10   :  { %s80_s0 = scalar_lea.vmem %s41_s14, 256  ;;  %p85_p6 = scmp.lt.s32.totalorder %s41_s14, %s41_s14 }
  0x11   :  { %56 = vtanh.f32 %v25_v2  ;;  %p81_p5 = scmp.ne.s32.totalorder %s41_s14, %s80_s0  ;;  %p86_p7 = scmp.lt.s32.totalorder %s80_s0, %s80_s0 }
  0x12   :  { %58 = vtanh.f32 %v26_v3 }
  0x13   :  { %p87_p8 = por %p86_p7, %p85_p6 }
  0x15   :  { %p88_p9 = pnand %p87_p8, %p81_p5 }
  0x1e   :  { %v57_v4 = vpop.eup %56 }
  0x1f   :  { %v59_v5 = vpop.eup %58  ;;  %v29_v6 = vmul.f32 0.5, %v57_v4 }
  0x20   :  { %v30_v7 = vmul.f32 0.5, %v59_v5 }
  0x21   :  { %v31_v8 = vadd.f32 0.5, %v29_v6 }
  0x22   :  { %v32_v9 = vadd.f32 0.5, %v30_v7 }
  0x23   :  { %33 = vst [vmem:[#allocation5] sm:$0xff] %v31_v8 }
  0x24   :  { %34 = vst [vmem:[#allocation5 + $0x8] sm:$0xff] %v32_v9 }
  0x25   :  { %91 = shalt.err (!%p88_p9)
}
  0x26   :  { %46 = dma.vmem_to_hbm [thread:$0]  %s41_s14, 256, %s131_s1, [#allocation4], %s105_s9, %s105_s9, %s106_s10  }
  0x27   :  { %102 = dma.done.wait [#allocation4], 256  }
  0x28   :  { %103 = vsyncadd [#allocation4], 4294967040 }
  0x29   :  { %50 = vsyncpa [#allocation3], 1 }
  0x2a   :  { %51 = vsyncpa [#allocation4], 1 }

</bundles_post_ra>
